<compile_context>
chip_gen: v7x
topology: tpu7x:2x2x1
jax: 0.10.0
libtpu: 0.0.40
codegen_flags: <defaults>
</compile_context>

<pallas_src>
import functools

import jax
import jax.numpy as jnp
from jax.experimental import pallas as pl
from jax.experimental.pallas import tpu as pltpu


# -----------------------------------------------------------------------------
# Pallas kernel: fused attention gate over one (channels, pixel-tile) block.
# -----------------------------------------------------------------------------
def _attention_block_kernel(g_ref, x_ref, wg_ref, wx_ref, bgx_ref,
                            wpsi_ref, bpsi_ref, o_ref, *, psi_on_mxu):
    # 1x1 conv + folded BN == per-pixel channel contraction (MXU) + bias.
    # Activations stay in their native dtype; accumulate in f32.
    g1 = jnp.dot(wg_ref[...], g_ref[...], preferred_element_type=jnp.float32)
    x1 = jnp.dot(wx_ref[...], x_ref[...], preferred_element_type=jnp.float32)
    h = jnp.maximum(g1 + x1 + bgx_ref[...], 0.0)          # ReLU, (F_int, T) f32

    # psi branch (F_int -> 1).
    if psi_on_mxu:
        # Large F_int: contraction on the otherwise-idle MXU slot.
        s = jnp.dot(wpsi_ref[...], h, preferred_element_type=jnp.float32)
    else:
        # Small F_int: VPU multiply + cross-sublane (XLU) reduce.
        s = jnp.sum(h * wpsi_ref[...], axis=0, keepdims=True)
    s = s + bpsi_ref[...]                                  # (1, T)

    # Sigmoid: exp on the EUP; divide via pl.reciprocal.
    psi = pl.reciprocal(1.0 + jnp.exp(-s))                 # (1, T) f32

    # Gate the skip connection directly from the input ref (no f32 copy of x).
    # Per-lane math only: ragged-tile OOB lanes are never reduced across and
    # their stores are dropped.
    o_ref[...] = (x_ref[...] * psi.astype(x_ref.dtype)).astype(o_ref.dtype)


# -----------------------------------------------------------------------------
# Wrapper helpers.
# -----------------------------------------------------------------------------
def _fold_conv_bn(w, b, gamma, beta, mean, var, eps=1e-5):
    """Fold eval-mode BatchNorm into a 1x1 conv: y = x @ W' + b'."""
    scale = gamma / jnp.sqrt(var + eps)            # (C_out,)
    w_f = w * scale[None, :]                       # (C_in, C_out)
    b_f = (b - mean) * scale + beta                # (C_out,)
    return w_f, b_f


def _tile_and_vmem(HW, B, F_g, F_l, F_int, g_isz, x_isz):
    """Static pixel-tile size, grid extent and scoped-VMEM limit per chip gen."""
    try:
        vmem_cap = int(pltpu.get_tpu_info().vmem_capacity_bytes)
    except Exception:            # non-TPU backend / older JAX: assume smallest
        vmem_cap = 64 << 20      # v7x = 64 MiB; v5e/v6e = 128 MiB

    budget = (vmem_cap * 3) // 4          # headroom for compiler scratch

    # Bytes per pixel lane: double-buffered g/x inputs + output, plus the f32
    # temporaries (g1, x1, h, psi, gate product) that live inside the body.
    io_per_lane = 2 * (F_g * g_isz + 2 * F_l * x_isz)
    f32_per_lane = 4 * (3 * F_int + F_l + 4)
    per_lane = io_per_lane + f32_per_lane

    # Constant operands (single copy); assume worst case double-buffered.
    w_isz = max(g_isz, x_isz)
    const_bytes = F_int * (F_g + F_l) * w_isz + 4 * (2 * F_int + 2)
    fixed = 2 * const_bytes + (2 << 20)

    lanes = max(128, ((budget - fixed) // per_lane) // 128 * 128)
    if lanes >= HW or HW <= 512:
        t_hw = HW                          # whole pixel row fits in one tile
    else:
        t_hw = max(512, lanes)             # multiple of 128 by construction

    # v7x has 2 TensorCores: make sure the fully-"parallel" grid has >= 2
    # steps so both cores get work even at B == 1.
    n_j = -(-HW // t_hw)
    if B * n_j < 2 and HW >= 256:
        t_hw = ((-(-HW // 2) + 127) // 128) * 128
        n_j = -(-HW // t_hw)

    est = fixed + per_lane * t_hw
    vmem_limit = int(min(vmem_cap * 92 // 100, max(est, 32 << 20)))
    return t_hw, n_j, vmem_limit, const_bytes


@jax.jit
def attention_block(g, x, params):
    """g: (B, F_g, H, W), x: (B, F_l, H, W)  ->  x * psi, (B, F_l, H, W)."""
    B, F_g, H, W = g.shape
    _, F_l, _, _ = x.shape
    HW = H * W

    wg, bg = _fold_conv_bn(params["wg"], params["bg"], params["gamma_g"],
                           params["beta_g"], params["mean_g"], params["var_g"])
    wx, bx = _fold_conv_bn(params["wx"], params["bx"], params["gamma_x"],
                           params["beta_x"], params["mean_x"], params["var_x"])
    wpsi, bpsi = _fold_conv_bn(params["wpsi"], params["bpsi"],
                               params["gamma_p"], params["beta_p"],
                               params["mean_p"], params["var_p"])
    F_int = wg.shape[1]

    # Weights in the activations' dtype (MXU-native when inputs are bf16);
    # biases stay f32 (added to the f32 accumulator).
    wg_t = wg.T.astype(g.dtype)                    # (F_int, F_g)
    wx_t = wx.T.astype(x.dtype)                    # (F_int, F_l)
    b_gx = (bg + bx).reshape(F_int, 1)             # pre-summed folded biases
    psi_on_mxu = F_int >= 128
    wpsi_blk = (wpsi.reshape(1, F_int) if psi_on_mxu
                else wpsi.reshape(F_int, 1)).astype(jnp.float32)
    bpsi_blk = bpsi.reshape(1, 1).astype(jnp.float32)

    # Free reshapes: channels on sublanes, pixels on the lane axis.
    g3 = g.reshape(B, F_g, HW)
    x3 = x.reshape(B, F_l, HW)

    g_isz = jnp.dtype(g.dtype).itemsize
    x_isz = jnp.dtype(x.dtype).itemsize
    t_hw, n_j, vmem_limit, const_bytes = _tile_and_vmem(
        HW, B, F_g, F_l, F_int, g_isz, x_isz)

    # Constant operands (same block every grid step): single-buffer them when
    # they are big enough for the saved VMEM to matter.
    const_kw = {}
    if hasattr(pl, "Buffered") and const_bytes >= (1 << 20):
        const_kw = dict(pipeline_mode=pl.Buffered(1))

    kernel = functools.partial(_attention_block_kernel, psi_on_mxu=psi_on_mxu)

    out3 = pl.pallas_call(
        kernel,
        out_shape=jax.ShapeDtypeStruct((B, F_l, HW), x.dtype),
        grid_spec=pltpu.PrefetchScalarGridSpec(
            num_scalar_prefetch=0,
            grid=(B, n_j),
            in_specs=[
                pl.BlockSpec((None, F_g, t_hw), lambda b, j: (b, 0, j)),   # g
                pl.BlockSpec((None, F_l, t_hw), lambda b, j: (b, 0, j)),   # x
                pl.BlockSpec((F_int, F_g), lambda b, j: (0, 0), **const_kw),
                pl.BlockSpec((F_int, F_l), lambda b, j: (0, 0), **const_kw),
                pl.BlockSpec((F_int, 1), lambda b, j: (0, 0), **const_kw),
                pl.BlockSpec(wpsi_blk.shape, lambda b, j: (0, 0), **const_kw),
                pl.BlockSpec((1, 1), lambda b, j: (0, 0)),                 # bpsi
            ],
            out_specs=pl.BlockSpec((None, F_l, t_hw), lambda b, j: (b, 0, j)),
        ),
        compiler_params=pltpu.CompilerParams(
            dimension_semantics=("parallel", "parallel"),
            vmem_limit_bytes=vmem_limit),
    )(g3, x3, wg_t, wx_t, b_gx, wpsi_blk, bpsi_blk)

    return out3.reshape(B, F_l, H, W)


# -----------------------------------------------------------------------------
# Deterministic parameter init + pure-JAX reference.
# -----------------------------------------------------------------------------
def make_params(key, F_g, F_l, F_int):
    ks = jax.random.split(key, 6)
    r = lambda n: jnp.arange(n, dtype=jnp.float32)
    return {
        # 1x1 conv weights stored as (C_in, C_out) (== PyTorch (C_out,C_in,1,1).T)
        "wg": jax.random.normal(ks[0], (F_g, F_int), jnp.float32) * 0.2,
        "bg": jax.random.normal(ks[1], (F_int,), jnp.float32) * 0.1,
        "wx": jax.random.normal(ks[2], (F_l, F_int), jnp.float32) * 0.2,
        "bx": jax.random.normal(ks[3], (F_int,), jnp.float32) * 0.1,
        "wpsi": jax.random.normal(ks[4], (F_int, 1), jnp.float32) * 0.2,
        "bpsi": jax.random.normal(ks[5], (1,), jnp.float32) * 0.1,
        # BatchNorm (eval mode) parameters — non-trivial but deterministic.
        "gamma_g": 1.0 + 0.05 * r(F_int), "beta_g": 0.01 * r(F_int),
        "mean_g": 0.02 * r(F_int), "var_g": 1.0 + 0.03 * r(F_int),
        "gamma_x": 1.0 - 0.02 * r(F_int), "beta_x": -0.01 * r(F_int),
        "mean_x": -0.02 * r(F_int), "var_x": 1.0 + 0.05 * r(F_int),
        "gamma_p": jnp.array([1.1], jnp.float32),
        "beta_p": jnp.array([0.05], jnp.float32),
        "mean_p": jnp.array([0.03], jnp.float32),
        "var_p": jnp.array([1.2], jnp.float32),
    }


def attention_block_ref(g, x, params, eps=1e-5):
    """Pure-JAX reference with the same semantics (eval-mode BN)."""
    hp = jax.lax.Precision.HIGHEST

    def conv_bn(inp, w, b, gamma, beta, mean, var):
        y = jnp.einsum("bchw,cd->bdhw", inp, w, precision=hp) \
            + b[None, :, None, None]
        s = gamma / jnp.sqrt(var + eps)
        return (y - mean[None, :, None, None]) * s[None, :, None, None] \
            + beta[None, :, None, None]

    g1 = conv_bn(g, params["wg"], params["bg"], params["gamma_g"],
                 params["beta_g"], params["mean_g"], params["var_g"])
    x1 = conv_bn(x, params["wx"], params["bx"], params["gamma_x"],
                 params["beta_x"], params["mean_x"], params["var_x"])
    h = jax.nn.relu(g1 + x1)
    psi = conv_bn(h, params["wpsi"], params["bpsi"], params["gamma_p"],
                  params["beta_p"], params["mean_p"], params["var_p"])
    psi = jax.nn.sigmoid(psi)                      # (B, 1, H, W)
    return x * psi


if __name__ == "__main__":
    key = jax.random.PRNGKey(0)

    def run_case(case_key, B, F_g, F_l, F_int, H, W):
        kg, kx, kp = jax.random.split(case_key, 3)
        g = jax.random.normal(kg, (B, F_g, H, W), jnp.float32)
        x = jax.random.normal(kx, (B, F_l, H, W), jnp.float32)
        params = make_params(kp, F_g, F_l, F_int)
        out = jax.block_until_ready(attention_block(g, x, params))
        ref = attention_block_ref(g, x, params)
        assert out.shape == (B, F_l, H, W)
        max_err = jnp.max(jnp.abs(out - ref))
        assert jnp.allclose(out, ref, atol=1e-4, rtol=1e-4), f"max err {max_err}"

    k1, k2 = jax.random.split(key)
    # Small-channel case (VPU psi path).
    run_case(k1, B=2, F_g=4, F_l=4, F_int=8, H=16, W=16)
    # Larger F_int: exercises the MXU psi path and the B=1 tile split that
    # keeps both v7x TensorCores busy.
    run_case(k2, B=1, F_g=32, F_l=32, F_int=128, H=16, W=16)

    # TODO(synk): inspect_attention=True variant (returning psi too) is not
    # exposed; only the default forward (x * psi) is implemented.
    print("KERNEL_OK")
</pallas_src>

<mosaic_0001>
module attributes {stable_mosaic.version = 11 : i64} {
  func.func @_attention_block_kernel(%arg0: i32, %arg1: i32, %arg2: memref<1x4x256xf32, #tpu.memory_space<vmem>>, %arg3: memref<1x4x256xf32, #tpu.memory_space<vmem>>, %arg4: memref<8x4xf32, #tpu.memory_space<vmem>>, %arg5: memref<8x4xf32, #tpu.memory_space<vmem>>, %arg6: memref<8x1xf32, #tpu.memory_space<vmem>>, %arg7: memref<8x1xf32, #tpu.memory_space<vmem>>, %arg8: memref<1x1xf32, #tpu.memory_space<vmem>>, %arg9: memref<1x4x256xf32, #tpu.memory_space<vmem>>) attributes {dimension_semantics = [#tpu.dimension_semantics<parallel>, #tpu.dimension_semantics<parallel>], iteration_bounds = array<i64: 2, 1>, scalar_prefetch = 0 : i64, scratch_operands = 0 : i64, tpu.core_type = #tpu.core_type<tc>, window_params = [{transform_indices = @transform_0, window_bounds = array<i64: 1, 4, 256>}, {transform_indices = @transform_1, window_bounds = array<i64: 1, 4, 256>}, {pipeline_mode = #tpu.pipeline_mode<synchronous>, transform_indices = @transform_2, window_bounds = array<i64: 8, 4>}, {pipeline_mode = #tpu.pipeline_mode<synchronous>, transform_indices = @transform_3, window_bounds = array<i64: 8, 4>}, {pipeline_mode = #tpu.pipeline_mode<synchronous>, transform_indices = @transform_4, window_bounds = array<i64: 8, 1>}, {pipeline_mode = #tpu.pipeline_mode<synchronous>, transform_indices = @transform_5, window_bounds = array<i64: 8, 1>}, {pipeline_mode = #tpu.pipeline_mode<synchronous>, transform_indices = @transform_6, window_bounds = array<i64: 1, 1>}, {transform_indices = @transform_7, window_bounds = array<i64: 1, 4, 256>}]} {
    %c0 = arith.constant 0 : index
    %c0_0 = arith.constant 0 : index
    %0 = vector.load %arg4[%c0, %c0_0] : memref<8x4xf32, #tpu.memory_space<vmem>>, vector<8x4xf32>
    %c0_1 = arith.constant 0 : index
    %c0_2 = arith.constant 0 : index
    %c0_3 = arith.constant 0 : index
    %1 = vector.load %arg2[%c0_1, %c0_2, %c0_3] : memref<1x4x256xf32, #tpu.memory_space<vmem>>, vector<1x4x256xf32>
    %2 = vector.shape_cast %1 : vector<1x4x256xf32> to vector<4x256xf32>
    %cst = arith.constant dense<0.000000e+00> : vector<8x256xf32>
    %3 = tpu.matmul %0, %2, %cst {dimension_numbers = #tpu.dot_dimension_numbers<[1], [0], [0], [1], [0, 0, 1, 1], [], []>} : vector<8x4xf32>, vector<4x256xf32>, vector<8x256xf32> -> vector<8x256xf32>
    %c0_4 = arith.constant 0 : index
    %c0_5 = arith.constant 0 : index
    %4 = vector.load %arg5[%c0_4, %c0_5] : memref<8x4xf32, #tpu.memory_space<vmem>>, vector<8x4xf32>
    %c0_6 = arith.constant 0 : index
    %c0_7 = arith.constant 0 : index
    %c0_8 = arith.constant 0 : index
    %5 = vector.load %arg3[%c0_6, %c0_7, %c0_8] : memref<1x4x256xf32, #tpu.memory_space<vmem>>, vector<1x4x256xf32>
    %6 = vector.shape_cast %5 : vector<1x4x256xf32> to vector<4x256xf32>
    %cst_9 = arith.constant dense<0.000000e+00> : vector<8x256xf32>
    %7 = tpu.matmul %4, %6, %cst_9 {dimension_numbers = #tpu.dot_dimension_numbers<[1], [0], [0], [1], [0, 0, 1, 1], [], []>} : vector<8x4xf32>, vector<4x256xf32>, vector<8x256xf32> -> vector<8x256xf32>
    %8 = arith.addf %3, %7 : vector<8x256xf32>
    %c0_10 = arith.constant 0 : index
    %c0_11 = arith.constant 0 : index
    %9 = vector.load %arg6[%c0_10, %c0_11] : memref<8x1xf32, #tpu.memory_space<vmem>>, vector<8x1xf32>
    %10 = vector.broadcast %9 : vector<8x1xf32> to vector<8x256xf32>
    %11 = arith.addf %8, %10 : vector<8x256xf32>
    %cst_12 = arith.constant 0.000000e+00 : f32
    %12 = vector.broadcast %cst_12 : f32 to vector<8x256xf32>
    %13 = arith.maximumf %11, %12 : vector<8x256xf32>
    %c0_13 = arith.constant 0 : index
    %c0_14 = arith.constant 0 : index
    %14 = vector.load %arg7[%c0_13, %c0_14] : memref<8x1xf32, #tpu.memory_space<vmem>>, vector<8x1xf32>
    %15 = vector.broadcast %14 : vector<8x1xf32> to vector<8x256xf32>
    %16 = arith.mulf %13, %15 : vector<8x256xf32>
    %cst_15 = arith.constant dense<0.000000e+00> : vector<256xf32>
    %17 = vector.multi_reduction <add>, %16, %cst_15 [0] : vector<8x256xf32> to vector<256xf32>
    %18 = vector.shape_cast %17 : vector<256xf32> to vector<1x256xf32>
    %c0_16 = arith.constant 0 : index
    %c0_17 = arith.constant 0 : index
    %19 = vector.load %arg8[%c0_16, %c0_17] : memref<1x1xf32, #tpu.memory_space<vmem>>, vector<1x1xf32>
    %20 = vector.broadcast %19 : vector<1x1xf32> to vector<1x256xf32>
    %21 = arith.addf %18, %20 : vector<1x256xf32>
    %cst_18 = arith.constant 0.000000e+00 : f32
    %22 = vector.broadcast %cst_18 : f32 to vector<1x256xf32>
    %23 = arith.subf %22, %21 : vector<1x256xf32>
    %24 = math.exp %23 : vector<1x256xf32>
    %cst_19 = arith.constant 1.000000e+00 : f32
    %25 = vector.broadcast %cst_19 : f32 to vector<1x256xf32>
    %26 = arith.addf %25, %24 : vector<1x256xf32>
    %27 = tpu.reciprocal %26 : vector<1x256xf32> -> vector<1x256xf32>
    %c0_20 = arith.constant 0 : index
    %c0_21 = arith.constant 0 : index
    %c0_22 = arith.constant 0 : index
    %28 = vector.load %arg3[%c0_20, %c0_21, %c0_22] : memref<1x4x256xf32, #tpu.memory_space<vmem>>, vector<1x4x256xf32>
    %29 = vector.shape_cast %28 : vector<1x4x256xf32> to vector<4x256xf32>
    %30 = vector.broadcast %27 : vector<1x256xf32> to vector<4x256xf32>
    %31 = arith.mulf %29, %30 : vector<4x256xf32>
    %c0_23 = arith.constant 0 : index
    %c0_24 = arith.constant 0 : index
    %c0_25 = arith.constant 0 : index
    %32 = vector.load %arg9[%c0_23, %c0_24, %c0_25] : memref<1x4x256xf32, #tpu.memory_space<vmem>>, vector<1x4x256xf32>
    %33 = vector.shape_cast %32 : vector<1x4x256xf32> to vector<4x256xf32>
    %34 = vector.shape_cast %31 : vector<4x256xf32> to vector<1x4x256xf32>
    tpu.vector_store %arg9[%c0_23, %c0_24, %c0_25], %34 {strides = array<i32>} : memref<1x4x256xf32, #tpu.memory_space<vmem>>, vector<1x4x256xf32>,
    return
  }
  func.func @transform_0(%arg0: i32, %arg1: i32) -> (i32, i32, i32) {
    %c0_i32 = arith.constant 0 : i32
    %c0_i32_0 = arith.constant 0 : i32
    return %arg0, %c0_i32, %arg1 : i32, i32, i32
  }
  func.func @transform_1(%arg0: i32, %arg1: i32) -> (i32, i32, i32) {
    %c0_i32 = arith.constant 0 : i32
    %c0_i32_0 = arith.constant 0 : i32
    return %arg0, %c0_i32, %arg1 : i32, i32, i32
  }
  func.func @transform_2(%arg0: i32, %arg1: i32) -> (i32, i32) {
    %c0_i32 = arith.constant 0 : i32
    %c0_i32_0 = arith.constant 0 : i32
    %c0_i32_1 = arith.constant 0 : i32
    return %c0_i32, %c0_i32_0 : i32, i32
  }
  func.func @transform_3(%arg0: i32, %arg1: i32) -> (i32, i32) {
    %c0_i32 = arith.constant 0 : i32
    %c0_i32_0 = arith.constant 0 : i32
    %c0_i32_1 = arith.constant 0 : i32
    return %c0_i32, %c0_i32_0 : i32, i32
  }
  func.func @transform_4(%arg0: i32, %arg1: i32) -> (i32, i32) {
    %c0_i32 = arith.constant 0 : i32
    %c0_i32_0 = arith.constant 0 : i32
    %c0_i32_1 = arith.constant 0 : i32
    return %c0_i32, %c0_i32_0 : i32, i32
  }
  func.func @transform_5(%arg0: i32, %arg1: i32) -> (i32, i32) {
    %c0_i32 = arith.constant 0 : i32
    %c0_i32_0 = arith.constant 0 : i32
    %c0_i32_1 = arith.constant 0 : i32
    return %c0_i32, %c0_i32_0 : i32, i32
  }
  func.func @transform_6(%arg0: i32, %arg1: i32) -> (i32, i32) {
    %c0_i32 = arith.constant 0 : i32
    %c0_i32_0 = arith.constant 0 : i32
    %c0_i32_1 = arith.constant 0 : i32
    return %c0_i32, %c0_i32_0 : i32, i32
  }
  func.func @transform_7(%arg0: i32, %arg1: i32) -> (i32, i32, i32) {
    %c0_i32 = arith.constant 0 : i32
    %c0_i32_0 = arith.constant 0 : i32
    return %arg0, %c0_i32, %arg1 : i32, i32, i32
  }
}

</mosaic_0001>

<bundles_post_ra>
// kernel: attention_block.1
= control target key start
LH: loop header
LB: loop body
LE: loop exit
PB: predicated region body
PF: predicated region fallthrough
CT: control target
= control target key end

     0   :  { %s816_s26 = smov 0   ;;  %s818_s27 = smov 0   ;;  %s875_s0 = inlined_call_operand.vmem [shape: f32[2,4,256], index: 0, kind: input, shape index: {}]   ;;  %s876_s1 = inlined_call_operand.vmem [shape: f32[2,4,256], index: 1, kind: input, shape index: {}]   ;;  %s877_s2 = inlined_call_operand.vmem [shape: f32[8,4], index: 2, kind: input, shape index: {}]   ;;  %s878_s3 = inlined_call_operand.vmem [shape: f32[8,4], index: 3, kind: input, shape index: {}]   ;;  %s879_s4 = inlined_call_operand.vmem [shape: f32[8,1], index: 4, kind: input, shape index: {}]   ;;  %s880_s5 = inlined_call_operand.vmem [shape: f32[8,1], index: 5, kind: input, shape index: {}]   ;;  %s881_s6 = inlined_call_operand.<no memory space> [shape: f32[1,1], index: 6, kind: input, shape index: {}]   ;;  %s882_s7 = inlined_call_operand.vmem [shape: f32[2,4,256], index: 7, kind: output, shape index: {}]  }
   0x1   :  { %v12_v0 = vstv %s881_s6  ;;  %s820_s28 = smov 0  }
   0x2   :  { %13 = vst [vmem:[#allocation2] sm:$0x1] %v12_v0 }
   0x3 LB: > { %s31_s6 = sadd.s32 1, %s765_s27  ;;  %p689_p0 = scmp.ge.s32.totalorder %s769_s28, 1  ;;  %s769_s28 = sphi %s820_s28, %s19_s28   ;;  %s765_s27 = sphi %s818_s27, %s884_s27   ;;  %s761_s26 = sphi %s816_s26, %s883_s26  }
   0x4   : > { %p33_p1 = scmp.ge.s32.totalorder %s31_s6, 2  ;;  %p277_p2 = scmp.lt.s32.totalorder %s769_s28, 3 }
   0x6   : > { %s886_s6 = smov (%p33_p1, %s31_s6), 0  ;;  %p278_p3 = pnand %p689_p0, %p277_p2 }
   0x7   : > { %p327_p4 = scmp.lt.s32.totalorder (!%p278_p3), %s761_s26, 1  ;;  %v771_v1 = vmov (!%p278_p3), 0.0   ;;  %v522_v2 = vld [vmem:[%s879_s4] sm:$0xff] (!%p278_p3)  ;;  %v772_v4 = vmov (!%p278_p3), 0   ;;  %vm366_vm0 = vcmask (!%p278_p3), 1043456   ;;  %vm362_vm1 = vcmask (!%p278_p3), 31744  }
   0x8   : > { %281 = sbr.rel (%p278_p3) target bundleno = 292 (0x124), region = 48  ;;  %435 = vmatprep.mubr.f32.mxu1 (!%p278_p3), %v771_v1  ;;  %515 = vmatprep.mubr.f32.mxu0 (!%p278_p3), %v771_v1  ;;  %v532_v5 = vld [vmem:[%s880_s5] sm:$0xff] (!%p278_p3)  ;;  %v558_v22 = vlaneseq (!%p278_p3) }
   0x9   : > { %v552_v3 = vld [vmem:[#allocation2] sm:$0x1] (!%p278_p3)  ;;  %735 = vset.pattern.permute.xlu0 (!%p278_p3), %v772_v4  ;;  %736 = vset.pattern.permute.xlu1 (!%p278_p3), %v772_v4 }
   0xa   : > { %525 = vperm.xlu0 (!%p278_p3), %735, %v522_v2   ;;  %555 = vperm.xlu1 (!%p278_p3), %736, %v552_v3   ;;  %v358_v10 = vld [vmem:[%s878_s3] sm:$0xff] (!%p278_p3)  ;;  %v559_v28 = vshrl.u32 (!%p278_p3), %v558_v22, 7 }
   0xb   : > { %v356_v11 = vld [vmem:[%s877_s2] sm:$0xff] (!%p278_p3) }
   0xc   : > { %v560_v33 = vsub.s32 (!%p278_p3), 0, %v559_v28 }
   0xe   : > { %535 = vperm.xlu0 (!%p278_p3), %735, %v532_v5  }
   0xf   : > { %s888_s26 = smov (!%p327_p4, %s761_s26), 1 }
  0x10   : > { %s837_s8 = sshll.u32 %s888_s26, 3 }
  0x11   : > { %s344_s13 = scalar_lea.vmem %s876_s1, %s837_s8  ;;  %s334_s16 = scalar_lea.vmem %s875_s0, %s837_s8 }
  0x12   : > { %v846_v6 = vld [vmem:[%s344_s13] sm:$0xff]  ;;  %s354_s23 = scalar_lea.vmem %s882_s7, %s837_s8 }
  0x13   : > { %v361_v7 = vcombine.high %v846_v6, %v846_v6  ;;  %v357_v8 = vld [vmem:[%s334_s16] sm:$0xff] }
  0x14   : > { %v443_v9 = vcombine.high %v357_v8, %v357_v8 }
  0x15   : > { %696 = vmatprep.subr.msk.mxu1 %vm366_vm0, %v361_v7 }
  0x16   : > { %699 = vmatprep.subr.msk.mxu0 %vm366_vm0, %v443_v9  ;;  %697 = vmatpush1.msk.msra.mxu1 %vm366_vm0, %v846_v6 }
  0x17   : > { %700 = vmatpush1.msk.msra.mxu0 %vm366_vm0, %v357_v8  ;;  %698 = vmatmul.mubr.msk.f32.vlgmr.msra.gmra.mrb[0].mxu1 %vm362_vm1, %v358_v10 }
  0x18   : > { %701 = vmatmul.mubr.msk.f32.vlgmr.msra.gmra.mrb[0].mxu0 %vm362_vm1, %v356_v11 }
  0x89   : > { %v526_v12 = vpop.permute.xlu0 %525  ;;  %v556_v35 = vpop.permute.xlu1 %555 }
  0x8a   : > { %v561_v39 = vrot.slane %v556_v35, %v560_v33 }
  0x8d   : > { %v536_v23 = vpop.permute.xlu0 %535 }
  0xea   : > { %v437_v13 = vpop.f32.mrb[0].mxu1 }
  0xeb   : > { %v517_v14 = vpop.f32.mrb[0].mxu0  ;;  %v439_v15 = vpop.f32.mrb[1].mxu1 }
  0xec   : > { %v518_v16 = vadd.f32 %v517_v14, %v437_v13  ;;  %v519_v17 = vpop.f32.mrb[1].mxu0 }
  0xed   : > { %v520_v18 = vadd.f32 %v519_v17, %v439_v15 }
  0xee   : > { %v528_v19 = vadd.f32 %v526_v12, %v518_v16 }
  0xef   : > { %v529_v20 = vadd.f32 %v526_v12, %v520_v18 }
  0xf0   : > { %v530_v21 = vmax.f32 %v528_v19, 0.0 }
  0xf1   : > { %v531_v24 = vmax.f32 %v529_v20, 0.0 }
  0xf2   : > { %v538_v25 = vmul.f32 %v536_v23, %v530_v21 }
  0xf3   : > { %v539_v26 = vmul.f32 %v536_v23, %v531_v24 }
  0xf4   : > { %v540_v27 = vrot.slane %v538_v25, 4 }
  0xf5   : > { %v546_v29 = vrot.slane %v539_v26, 4 }
  0xf6   : > { %v541_v30 = vadd.f32 %v540_v27, %v538_v25 }
  0xf7   : > { %v547_v31 = vadd.f32 %v546_v29, %v539_v26 }
  0xf8   : > { %v542_v32 = vrot.slane %v541_v30, 2 }
  0xf9   : > { %v548_v34 = vrot.slane %v547_v31, 2 }
  0xfa   : > { %v543_v36 = vadd.f32 %v542_v32, %v541_v30 }
  0xfb   : > { %v549_v37 = vadd.f32 %v548_v34, %v547_v31 }
  0xfc   : > { %v544_v38 = vrot.slane %v543_v36, 1 }
  0xfd   : > { %v550_v40 = vrot.slane %v549_v37, 1 }
  0xfe   : > { %v545_v41 = vadd.f32 %v544_v38, %v543_v36 }
  0xff   : > { %v551_v42 = vadd.f32 %v550_v40, %v549_v37 }
 0x100   : > { %v562_v43 = vadd.f32 %v561_v39, %v545_v41 }
 0x101   : > { %v563_v44 = vadd.f32 %v561_v39, %v551_v42 }
 0x102   : > { %v564_v45 = vsub.f32 0.0, %v562_v43 }
 0x103   : > { %v565_v46 = vsub.f32 0.0, %v563_v44 }
 0x104   : > { %v566_v47 = vmul.f32 1.442695, %v564_v45 }
 0x105   : > { %v568_v48 = vmul.f32 1.442695, %v565_v46 }
 0x106   : > { %739 = vpow2.f32 %v566_v47 }
 0x107   : > { %741 = vpow2.f32 %v568_v48 }
 0x110   : > { %v740_v49 = vpop.eup %739 }
 0x111   : > { %v742_v50 = vpop.eup %741  ;;  %v570_v51 = vadd.f32 1.0, %v740_v49 }
 0x112   : > { %v571_v52 = vadd.f32 1.0, %v742_v50 }
 0x113   : > { %743 = vrcp.f32 %v570_v51 }
 0x114   : > { %745 = vrcp.f32 %v571_v52 }
 0x11d   : > { %v744_v53 = vpop.eup %743 }
 0x11e   : > { %v746_v54 = vpop.eup %745 }
 0x11f   : > { %v576_v55 = vcombine.low %v744_v53, %v746_v54 }
 0x121   : > { %v578_v56 = vmul.f32 %v576_v55, %v846_v6 }
 0x123   : > { %579 = vst [vmem:[%s354_s23] sm:$0xff] %v578_v56 }
 0x124 PF: > { %s19_s28 = sadd.s32 1, %s769_s28   ;;  %s883_s26 = smov %s765_s27 }
 0x125   : > { %p16_p5 = scmp.ge.s32.totalorder %s19_s28, 4   ;;  %s884_s27 = smov %s886_s6 }
 0x127   :  { %18 = sbr.rel (!%p16_p5) target bundleno = 3 (0x3), region = 81 }

</bundles_post_ra>
